<compile_context>
chip_gen: v6e
topology: v6e:2x2x1
jax: 0.10.0
libtpu: 0.0.40
codegen_flags: <defaults>
</compile_context>

<pallas_src>
import functools

import jax
import jax.numpy as jnp
from jax.experimental import pallas as pl
from jax.experimental.pallas import tpu as pltpu


def _upsample_kernel(x_ref, w_ref, b_ref, o_ref, *,
                     n_groups, gw_cin, gw_cout2, w_cout2):
    # x_ref : (rows, W*Cin)            lane-dense input rows (one row = one (n,h) line)
    # w_ref : (GW*Cin, 2*GW*2*Cout)    block-diagonal weight, cols ordered (kh, j, kw, co)
    # b_ref : (1, 2*GW*2*Cout)         bias tiled to the same column order (f32)
    # o_ref : (rows, 2*W*2*Cout)       lane-dense output rows, cols ordered (kh, w, kw, co)
    w = w_ref[...]
    b = b_ref[...]
    for g in range(n_groups):                      # small static unroll (W // GW)
        xg = x_ref[:, g * gw_cin:(g + 1) * gw_cin]             # 128-aligned lane slice
        acc = jnp.dot(xg, w, preferred_element_type=jnp.float32) + b
        acc = acc.astype(o_ref.dtype)
        # kh = 0 half of this pixel group, then kh = 1 half; both are dense,
        # 128-aligned lane stores (no vst.msk) for the sizes chosen below.
        o_ref[:, g * gw_cout2:(g + 1) * gw_cout2] = acc[:, :gw_cout2]
        o_ref[:, w_cout2 + g * gw_cout2:w_cout2 + (g + 1) * gw_cout2] = acc[:, gw_cout2:]


def _pick_pixel_group(W, cout2):
    """Smallest divisor g of W with g*cout2 a multiple of 128 (lane width)."""
    for g in range(1, W + 1):
        if W % g == 0 and (g * cout2) % 128 == 0:
            return g
    # Fallback: group the whole row.  Stores may be lane-unaligned (slower but
    # still correct) when W*cout2 is not a multiple of 128.
    return W


def upsample_forward(x, weight, bias, *, block_rows=1024, compute_dtype=None,
                     out_dtype=None, vmem_block_budget=20 * 1024 * 1024):
    """Forward of Upsample (ConvTranspose2d k=2, s=2) in NHWC.

    x      : (N, H, W, Cin)  float32
    weight : (Cin, Cout, 2, 2) float32 (PyTorch ConvTranspose2d layout)
    bias   : (Cout,) float32
    compute_dtype : optional cast (e.g. jnp.bfloat16) for x / weight DMA+MXU.
    returns: (N, 2H, 2W, Cout) in `out_dtype` (default: x.dtype)
    """
    N, H, W, Cin = x.shape
    Cout = weight.shape[1]
    Cout2 = 2 * Cout          # kw-fused channel count
    NH = N * H

    compute_dtype = x.dtype if compute_dtype is None else compute_dtype
    out_dtype = x.dtype if out_dtype is None else out_dtype

    GW = _pick_pixel_group(W, Cout2)      # pixels grouped per MXU matmul
    n_groups = W // GW
    gw_cin = GW * Cin
    gw_cout2 = GW * Cout2
    w_cout2 = W * Cout2

    # w_kk[kh, ci, kw*Cout + co] = weight[ci, co, kh, kw]
    w_kk = jnp.transpose(weight, (2, 0, 3, 1)).reshape(2, Cin, Cout2)
    # Block-diagonal expansion over GW pixel positions, then fuse kh into the
    # columns:  w_big[j*Cin + a, kh*GW*Cout2 + J*Cout2 + kw*Cout + co]
    #             = (j == J) * weight[a, co, kh, kw]
    eye = jnp.eye(GW, dtype=weight.dtype)
    bd = jnp.einsum("jJ,kac->kjaJc", eye, w_kk).reshape(2, gw_cin, gw_cout2)
    w_big = jnp.transpose(bd, (1, 0, 2)).reshape(gw_cin, 2 * gw_cout2)
    w_big = w_big.astype(compute_dtype)
    # Bias tiled to the (kh, j, kw, co) column order; kept f32 (added post-MXU).
    b_big = jnp.tile(bias, 2 * GW * 2).reshape(1, 2 * gw_cout2).astype(jnp.float32)

    # Lane-dense input slab: pure metadata reshape of the contiguous NHWC input.
    x_r = x.reshape(NH, W * Cin).astype(compute_dtype)

    # ---- Row-block sizing: VMEM-budgeted, sublane-aligned, >= 2 grid steps ----
    in_row_b = W * Cin * jnp.dtype(compute_dtype).itemsize
    out_row_b = 2 * w_cout2 * jnp.dtype(out_dtype).itemsize
    rows_fit = max(8, vmem_block_budget // (2 * (in_row_b + out_row_b)))  # 2x: double-buffered
    rows = min(block_rows, NH, rows_fit)
    if NH >= 16:
        rows = min(rows, -(-NH // 2))     # keep >= 2 grid steps so v7x's 2 TCs both get work
    if rows < NH:
        rows = max(8, (rows // 8) * 8)    # (8,128) sublane rule (last block may be ragged)
    grid = (pl.cdiv(NH, rows),)           # ragged edge handled by Pallas (no pad / slice pass)

    kernel = functools.partial(_upsample_kernel, n_groups=n_groups,
                               gw_cin=gw_cin, gw_cout2=gw_cout2, w_cout2=w_cout2)

    cost = pl.CostEstimate(
        flops=2 * NH * n_groups * gw_cin * (2 * gw_cout2),
        transcendentals=0,
        bytes_accessed=(NH * W * Cin * jnp.dtype(compute_dtype).itemsize
                        + NH * 2 * w_cout2 * jnp.dtype(out_dtype).itemsize
                        + gw_cin * 2 * gw_cout2 * jnp.dtype(compute_dtype).itemsize
                        + 2 * gw_cout2 * 4),
    )

    # Output slab (NH, 2*W*2*Cout): row-major identical to the final
    # (N, 2H, 2W, Cout) NHWC tensor, so the pixel shuffle is free.
    y = pl.pallas_call(
        kernel,
        out_shape=jax.ShapeDtypeStruct((NH, 2 * w_cout2), out_dtype),
        grid=grid,
        in_specs=[
            pl.BlockSpec((rows, W * Cin), lambda i: (i, 0)),
            pl.BlockSpec((gw_cin, 2 * gw_cout2), lambda i: (0, 0)),
            pl.BlockSpec((1, 2 * gw_cout2), lambda i: (0, 0)),
        ],
        out_specs=pl.BlockSpec((rows, 2 * w_cout2), lambda i: (i, 0)),
        compiler_params=pltpu.CompilerParams(
            # Single parallel axis: v7x's 2 TensorCores split the row blocks;
            # free on v5e/v6e.
            dimension_semantics=("parallel",),
            # Lane-dense blocks are <= ~20 MiB double-buffered by construction;
            # 32 MiB is safe on every generation (v7x: 32 MiB scoped / 64 MiB
            # physical).  On v5e/v6e this could be raised further.
            vmem_limit_bytes=32 * 1024 * 1024,
        ),
        cost_estimate=cost,
    )(x_r, w_big, b_big)

    # Free metadata reshape to NHWC.
    return y.reshape(N, 2 * H, 2 * W, Cout)


def _reference_forward(x, weight, bias):
    # Pure-JAX reference of ConvTranspose2d(k=2, s=2) in NHWC.
    N, H, W, Cin = x.shape
    Cout = weight.shape[1]
    y = jnp.einsum("nhwc,cokl->nhwklo", x, weight) + bias
    y = jnp.transpose(y, (0, 1, 3, 2, 4, 5)).reshape(N, 2 * H, 2 * W, Cout)
    return y


if __name__ == "__main__":
    key = jax.random.PRNGKey(0)
    N, H, W = 2, 16, 16
    in_channel, out_channel = 32, 16

    kx, kwt, kb = jax.random.split(key, 3)
    x = jax.random.normal(kx, (N, H, W, in_channel), dtype=jnp.float32)
    # PyTorch ConvTranspose2d weight shape (in_channels, out_channels, kH, kW),
    # init mimicking uniform(-sqrt(k), sqrt(k)).
    k = 1.0 / (in_channel * 2 * 2)
    bound = k ** 0.5
    weight = jax.random.uniform(kwt, (in_channel, out_channel, 2, 2),
                                dtype=jnp.float32, minval=-bound, maxval=bound)
    bias = jax.random.uniform(kb, (out_channel,), dtype=jnp.float32,
                              minval=-bound, maxval=bound)

    ref = _reference_forward(x, weight, bias)

    # f32 path (matches the PyTorch module's numerics).
    out = jax.block_until_ready(upsample_forward(x, weight, bias))
    assert out.shape == (N, 2 * H, 2 * W, out_channel), out.shape
    assert jnp.allclose(out, ref, atol=1e-4, rtol=1e-4), "f32 kernel mismatch vs reference"

    # bf16-compute fast path (halves input DMA, native single-pass MXU).
    out_bf16 = jax.block_until_ready(
        upsample_forward(x, weight, bias, compute_dtype=jnp.bfloat16))
    assert out_bf16.shape == out.shape
    assert jnp.allclose(out_bf16, ref, atol=3e-2, rtol=3e-2), "bf16 kernel mismatch vs reference"

    print("KERNEL_OK")
</pallas_src>

<mosaic_0001>
module attributes {stable_mosaic.version = 11 : i64} {
  func.func @_upsample_kernel(%arg0: i32, %arg1: memref<16x512xf32, #tpu.memory_space<vmem>>, %arg2: memref<128x256xf32, #tpu.memory_space<vmem>>, %arg3: memref<1x256xf32, #tpu.memory_space<vmem>>, %arg4: memref<16x1024xf32, #tpu.memory_space<vmem>>) attributes {dimension_semantics = [#tpu.dimension_semantics<parallel>], iteration_bounds = array<i64: 2>, scalar_prefetch = 0 : i64, scratch_operands = 0 : i64, tpu.core_type = #tpu.core_type<tc>, window_params = [{transform_indices = @transform_0, window_bounds = array<i64: 16, 512>}, {pipeline_mode = #tpu.pipeline_mode<synchronous>, transform_indices = @transform_1, window_bounds = array<i64: 128, 256>}, {pipeline_mode = #tpu.pipeline_mode<synchronous>, transform_indices = @transform_2, window_bounds = array<i64: 1, 256>}, {transform_indices = @transform_3, window_bounds = array<i64: 16, 1024>}]} {
    %c0 = arith.constant 0 : index
    %c0_0 = arith.constant 0 : index
    %0 = vector.load %arg2[%c0, %c0_0] : memref<128x256xf32, #tpu.memory_space<vmem>>, vector<128x256xf32>
    %c0_1 = arith.constant 0 : index
    %c0_2 = arith.constant 0 : index
    %1 = vector.load %arg3[%c0_1, %c0_2] : memref<1x256xf32, #tpu.memory_space<vmem>>, vector<1x256xf32>
    %c0_3 = arith.constant 0 : index
    %c0_4 = arith.constant 0 : index
    %2 = vector.load %arg1[%c0_3, %c0_4] : memref<16x512xf32, #tpu.memory_space<vmem>>, vector<16x128xf32>
    %cst = arith.constant dense<0.000000e+00> : vector<16x256xf32>
    %3 = tpu.matmul %2, %0, %cst {dimension_numbers = #tpu.dot_dimension_numbers<[1], [0], [0], [1], [0, 0, 1, 1], [], []>} : vector<16x128xf32>, vector<128x256xf32>, vector<16x256xf32> -> vector<16x256xf32>
    %4 = vector.broadcast %1 : vector<1x256xf32> to vector<16x256xf32>
    %5 = arith.addf %3, %4 : vector<16x256xf32>
    %6 = vector.extract_strided_slice %5 {offsets = [0, 0], sizes = [16, 128], strides = [1, 1]} : vector<16x256xf32> to vector<16x128xf32>
    %c0_5 = arith.constant 0 : index
    %c0_6 = arith.constant 0 : index
    %7 = vector.load %arg4[%c0_5, %c0_6] : memref<16x1024xf32, #tpu.memory_space<vmem>>, vector<16x128xf32>
    tpu.vector_store %arg4[%c0_5, %c0_6], %6 {strides = array<i32>} : memref<16x1024xf32, #tpu.memory_space<vmem>>, vector<16x128xf32>,
    %8 = vector.extract_strided_slice %5 {offsets = [0, 128], sizes = [16, 128], strides = [1, 1]} : vector<16x256xf32> to vector<16x128xf32>
    %c0_7 = arith.constant 0 : index
    %c512 = arith.constant 512 : index
    %9 = vector.load %arg4[%c0_7, %c512] : memref<16x1024xf32, #tpu.memory_space<vmem>>, vector<16x128xf32>
    tpu.vector_store %arg4[%c0_7, %c512], %8 {strides = array<i32>} : memref<16x1024xf32, #tpu.memory_space<vmem>>, vector<16x128xf32>,
    %c0_8 = arith.constant 0 : index
    %c128 = arith.constant 128 : index
    %10 = vector.load %arg1[%c0_8, %c128] : memref<16x512xf32, #tpu.memory_space<vmem>>, vector<16x128xf32>
    %cst_9 = arith.constant dense<0.000000e+00> : vector<16x256xf32>
    %11 = tpu.matmul %10, %0, %cst_9 {dimension_numbers = #tpu.dot_dimension_numbers<[1], [0], [0], [1], [0, 0, 1, 1], [], []>} : vector<16x128xf32>, vector<128x256xf32>, vector<16x256xf32> -> vector<16x256xf32>
    %12 = vector.broadcast %1 : vector<1x256xf32> to vector<16x256xf32>
    %13 = arith.addf %11, %12 : vector<16x256xf32>
    %14 = vector.extract_strided_slice %13 {offsets = [0, 0], sizes = [16, 128], strides = [1, 1]} : vector<16x256xf32> to vector<16x128xf32>
    %c0_10 = arith.constant 0 : index
    %c128_11 = arith.constant 128 : index
    %15 = vector.load %arg4[%c0_10, %c128_11] : memref<16x1024xf32, #tpu.memory_space<vmem>>, vector<16x128xf32>
    tpu.vector_store %arg4[%c0_10, %c128_11], %14 {strides = array<i32>} : memref<16x1024xf32, #tpu.memory_space<vmem>>, vector<16x128xf32>,
    %16 = vector.extract_strided_slice %13 {offsets = [0, 128], sizes = [16, 128], strides = [1, 1]} : vector<16x256xf32> to vector<16x128xf32>
    %c0_12 = arith.constant 0 : index
    %c640 = arith.constant 640 : index
    %17 = vector.load %arg4[%c0_12, %c640] : memref<16x1024xf32, #tpu.memory_space<vmem>>, vector<16x128xf32>
    tpu.vector_store %arg4[%c0_12, %c640], %16 {strides = array<i32>} : memref<16x1024xf32, #tpu.memory_space<vmem>>, vector<16x128xf32>,
    %c0_13 = arith.constant 0 : index
    %c256 = arith.constant 256 : index
    %18 = vector.load %arg1[%c0_13, %c256] : memref<16x512xf32, #tpu.memory_space<vmem>>, vector<16x128xf32>
    %cst_14 = arith.constant dense<0.000000e+00> : vector<16x256xf32>
    %19 = tpu.matmul %18, %0, %cst_14 {dimension_numbers = #tpu.dot_dimension_numbers<[1], [0], [0], [1], [0, 0, 1, 1], [], []>} : vector<16x128xf32>, vector<128x256xf32>, vector<16x256xf32> -> vector<16x256xf32>
    %20 = vector.broadcast %1 : vector<1x256xf32> to vector<16x256xf32>
    %21 = arith.addf %19, %20 : vector<16x256xf32>
    %22 = vector.extract_strided_slice %21 {offsets = [0, 0], sizes = [16, 128], strides = [1, 1]} : vector<16x256xf32> to vector<16x128xf32>
    %c0_15 = arith.constant 0 : index
    %c256_16 = arith.constant 256 : index
    %23 = vector.load %arg4[%c0_15, %c256_16] : memref<16x1024xf32, #tpu.memory_space<vmem>>, vector<16x128xf32>
    tpu.vector_store %arg4[%c0_15, %c256_16], %22 {strides = array<i32>} : memref<16x1024xf32, #tpu.memory_space<vmem>>, vector<16x128xf32>,
    %24 = vector.extract_strided_slice %21 {offsets = [0, 128], sizes = [16, 128], strides = [1, 1]} : vector<16x256xf32> to vector<16x128xf32>
    %c0_17 = arith.constant 0 : index
    %c768 = arith.constant 768 : index
    %25 = vector.load %arg4[%c0_17, %c768] : memref<16x1024xf32, #tpu.memory_space<vmem>>, vector<16x128xf32>
    tpu.vector_store %arg4[%c0_17, %c768], %24 {strides = array<i32>} : memref<16x1024xf32, #tpu.memory_space<vmem>>, vector<16x128xf32>,
    %c0_18 = arith.constant 0 : index
    %c384 = arith.constant 384 : index
    %26 = vector.load %arg1[%c0_18, %c384] : memref<16x512xf32, #tpu.memory_space<vmem>>, vector<16x128xf32>
    %cst_19 = arith.constant dense<0.000000e+00> : vector<16x256xf32>
    %27 = tpu.matmul %26, %0, %cst_19 {dimension_numbers = #tpu.dot_dimension_numbers<[1], [0], [0], [1], [0, 0, 1, 1], [], []>} : vector<16x128xf32>, vector<128x256xf32>, vector<16x256xf32> -> vector<16x256xf32>
    %28 = vector.broadcast %1 : vector<1x256xf32> to vector<16x256xf32>
    %29 = arith.addf %27, %28 : vector<16x256xf32>
    %30 = vector.extract_strided_slice %29 {offsets = [0, 0], sizes = [16, 128], strides = [1, 1]} : vector<16x256xf32> to vector<16x128xf32>
    %c0_20 = arith.constant 0 : index
    %c384_21 = arith.constant 384 : index
    %31 = vector.load %arg4[%c0_20, %c384_21] : memref<16x1024xf32, #tpu.memory_space<vmem>>, vector<16x128xf32>
    tpu.vector_store %arg4[%c0_20, %c384_21], %30 {strides = array<i32>} : memref<16x1024xf32, #tpu.memory_space<vmem>>, vector<16x128xf32>,
    %32 = vector.extract_strided_slice %29 {offsets = [0, 128], sizes = [16, 128], strides = [1, 1]} : vector<16x256xf32> to vector<16x128xf32>
    %c0_22 = arith.constant 0 : index
    %c896 = arith.constant 896 : index
    %33 = vector.load %arg4[%c0_22, %c896] : memref<16x1024xf32, #tpu.memory_space<vmem>>, vector<16x128xf32>
    tpu.vector_store %arg4[%c0_22, %c896], %32 {strides = array<i32>} : memref<16x1024xf32, #tpu.memory_space<vmem>>, vector<16x128xf32>,
    return
  }
  func.func @transform_0(%arg0: i32) -> (i32, i32) {
    %c0_i32 = arith.constant 0 : i32
    %c0_i32_0 = arith.constant 0 : i32
    return %arg0, %c0_i32 : i32, i32
  }
  func.func @transform_1(%arg0: i32) -> (i32, i32) {
    %c0_i32 = arith.constant 0 : i32
    %c0_i32_0 = arith.constant 0 : i32
    %c0_i32_1 = arith.constant 0 : i32
    return %c0_i32, %c0_i32_0 : i32, i32
  }
  func.func @transform_2(%arg0: i32) -> (i32, i32) {
    %c0_i32 = arith.constant 0 : i32
    %c0_i32_0 = arith.constant 0 : i32
    %c0_i32_1 = arith.constant 0 : i32
    return %c0_i32, %c0_i32_0 : i32, i32
  }
  func.func @transform_3(%arg0: i32) -> (i32, i32) {
    %c0_i32 = arith.constant 0 : i32
    %c0_i32_0 = arith.constant 0 : i32
    return %arg0, %c0_i32 : i32, i32
  }
}

</mosaic_0001>

<bundles_post_ra>
// kernel: tpu_custom_call.1
= control target key start
LH: loop header
LB: loop body
LE: loop exit
PB: predicated region body
PF: predicated region fallthrough
CT: control target
= control target key end

     0   :  { %8 = vsyncpa [#allocation3], 0  ;;  %s1331_s0 = inlined_call_operand.hbm [shape: f32[32,512], index: 0, kind: input, shape index: {}]   ;;  %s1332_s1 = inlined_call_operand.hbm [shape: f32[128,256], index: 1, kind: input, shape index: {}]   ;;  %s1333_s2 = inlined_call_operand.vmem [shape: f32[1,256], index: 2, kind: input, shape index: {}]   ;;  %s1334_s3 = inlined_call_operand.hbm [shape: f32[32,1024], index: 3, kind: output, shape index: {}]  }
   0x1   :  { %10 = vsyncpa [#allocation3 + $0x1], 0 }
   0x2   :  { %11 = vsyncpa [#allocation6], 0 }
   0x3   :  { %12 = vsyncpa [#allocation4], 0 }
   0x4   :  { %14 = vsyncpa [#allocation4 + $0x1], 0  ;;  %s921_s12 = smov 0   ;;  %s923_s13 = smov 0  }
   0x5   :  { %s925_s14 = smov 0   ;;  %s927_s15 = smov 0  }
   0x6 LB: > { %s942_s16 = sadd.s32 4294967295, %s889_s15   ;;  %s681_s17 = sadd.s32 4294967294, %s889_s15   ;;  %s889_s15 = sphi %s927_s15, %s1356_s15   ;;  %s885_s14 = sphi %s925_s14, %s1355_s14   ;;  %s881_s13 = sphi %s923_s13, %s1354_s13   ;;  %s877_s12 = sphi %s921_s12, %s1353_s12  }
   0x7   : > { %p40_p0 = scmp.ne.s32.totalorder %s881_s13, %s877_s12  ;;  %p1335_p1 = scmp.eq.s32.totalorder %s942_s16, 0 }
   0x8   : > { %p112_p3 = scmp.eq.s32.totalorder %s681_s17, 1  ;;  %p682_p5 = scmp.ge.s32.totalorder %s889_s15, 1 }
   0x9   : > { %p951_p4 = por %p1335_p1, %p40_p0  ;;  %p119_p7 = scmp.lt.s32.totalorder %s889_s15, 3 }
   0xa   : > { %p956_p6 = por %p112_p3, %p40_p0  ;;  %s891_s21 = smov [#allocation5]  }
   0xb   : > { %s1339_s18 = scalar_select %p951_p4, 1, 0 }
   0xc   : > { %s1340_s19 = scalar_select %p956_p6, 1, 0 }
   0xd   : > { %p961_p8 = pnand %p682_p5, %p119_p7  ;;  %s131_s22 = sshll.u32 %s891_s21, 4  ;;  %s132_s22 = int_to_ptr.vmem [resolvable:$true] %s131_s22 }
   0xe   : > { %s975_s24 = sadd.s32 1, %s889_s15   ;;  %s27_s25 = sadd.s32 1, %s885_s14 }
   0xf   : > { %s1341_s20 = scalar_select %p961_p8, 1, 0 }
  0x10   : > { %p711_p9 = pneg %p961_p8  ;;  %s24_s26 = ssub.s32 %s889_s15, %s975_s24 }
  0x11   : > { %s778_s27 = scalar_lea.vmem %s132_s22, 4096  ;;  %p786_p5 = scmp.lt.s32.totalorder %s132_s22, %s132_s22 }
  0x12   : > { %p970_p11 = pnand %p711_p9, %p1335_p1  ;;  %p779_p13 = scmp.ne.s32.totalorder %s132_s22, %s778_s27 }
  0x13   : > { %p787_p7 = scmp.lt.s32.totalorder %s778_s27, %s778_s27 }
  0x14   : > { %p769_p12 = pneg %p970_p11 }
  0x15   : > { %p788_p10 = por %p787_p7, %p786_p5 }
  0x16   : > { %p781_p0 = pnand %p779_p13, %p769_p12 }
  0x18   : > { %p782_p3 = pneg %p781_p0 }
  0x1a   : > { %p789_p2 = pnand %p788_p10, %p782_p3 }
  0x1c   : > { %792 = shalt.err (!%p789_p2)
}
  0x1d   : > { %s892_s28 = smov 256   ;;  %s893_s29 = smov 16  }
  0x1e   : > { %714 = dma.hbm_to_vmem [thread:$0]  (!%p970_p11), %s1332_s1, 4096, %s132_s22, [#allocation6], %s892_s28, %s892_s28, %s893_s29  }
  0x1f   : > { %p25_p9 = scmp.eq.s32.totalorder %s24_s26, 0  ;;  %p34_p12 = scmp.ne.s32.totalorder %s885_s14, %s881_s13 }
  0x20   : > { %p35_p10 = scmp.eq.s32.totalorder %s889_s15, 0  ;;  %p724_p2 = scmp.lt.s32.totalorder %s889_s15, 2 }
  0x21   : > { %s992_s5 = scalar_select %p25_p9, %s885_s14, %s27_s25  }
  0x22   : > { %p36_p13 = por %p35_p10, %p34_p12  ;;  %p1343_p0 = scmp.eq.s32.totalorder %s942_s16, 1 }
  0x23   : > { %s148_s7 = sand.u32 1, %s885_s14   ;;  %s700_s8 = sshll.u32 %s889_s15, 10 }
  0x24   : > { %p996_p3 = por %p1343_p0, %p34_p12  ;;  %s685_s9 = sshll.u32 %s148_s7, 6 }
  0x25   : > { %s1005_s17 = scalar_lea.hbm %s1331_s0, %s700_s8  ;;  %s152_s21 = scalar_lea.vmem [#allocation2], %s685_s9 }
  0x26   : > { %s1344_s6 = scalar_select %p996_p3, 1, 0 }
  0x27   : > { %s160_s22 = sshll.u32 %s152_s21, 4  ;;  %p1007_p11 = pnand %p724_p2, %p36_p13  ;;  %s1011_s22 = int_to_ptr.vmem [resolvable:$true] %s160_s22 }
  0x28   : > { %s1013_s25 = scalar_lea.sflag [#allocation3], %s148_s7  ;;  %s793_s26 = scalar_lea.hbm %s1005_s17, 1024 }
  0x29   : > { %p794_p5 = scmp.ne.s32.totalorder %s1005_s17, %s793_s26  ;;  %p795_p7 = pneg %p1007_p11 }
  0x2a   : > { %s798_s29 = scalar_lea.hbm %s1331_s0, 2048  ;;  %p799_p10 = scmp.lt.s32.totalorder %s1005_s17, %s1331_s0 }
  0x2b   : > { %p796_p9 = pnand %p795_p7, %p794_p5  ;;  %p800_p2 = scmp.lt.s32.totalorder %s798_s29, %s793_s26 }
  0x2d   : > { %p797_p12 = pneg %p796_p9  ;;  %p801_p13 = por %p800_p2, %p799_p10 }
  0x2f   : > { %p802_p0 = pnand %p801_p13, %p797_p12 }
  0x31   : > { %805 = shalt.err (!%p802_p0)
}
  0x32   : > { %s806_s7 = scalar_lea.vmem %s1011_s22, 1024  ;;  %s894_s8 = smov [#allocation2]  }
  0x33   : > { %p807_p1 = scmp.ne.s32.totalorder %s1011_s22, %s806_s7  ;;  %s811_s9 = sshll.u32 %s894_s8, 4  ;;  %s812_s9 = int_to_ptr.vmem [resolvable:$false] %s811_s9 }
  0x34   : > { %s813_s10 = scalar_lea.vmem %s812_s9, 2048  ;;  %p814_p9 = scmp.lt.s32.totalorder %s1011_s22, %s812_s9 }
  0x35   : > { %p809_p6 = pnand %p807_p1, %p795_p7  ;;  %p815_p3 = scmp.lt.s32.totalorder %s813_s10, %s806_s7 }
  0x37   : > { %p810_p5 = pneg %p809_p6  ;;  %p816_p4 = por %p815_p3, %p814_p9 }
  0x39   : > { %p817_p8 = pnand %p816_p4, %p810_p5 }
  0x3b   : > { %820 = shalt.err (!%p817_p8)
}
  0x3c   : > { %s895_s11 = smov 512   ;;  %s896_s21 = smov 32  }
  0x3d   : > { %718 = dma.hbm_to_vmem [thread:$0]  (!%p1007_p11), %s1005_s17, 1024, %s1011_s22, %s1013_s25, %s895_s11, %s895_s11, %s896_s21  }
  0x3e   : > { %p1346_p1 = scmp.ne.s32.totalorder %s1341_s20, 0 }
  0x3f   : > { %s1037_s26 = sand.u32 (!%p1346_p1), 1, %s881_s13   ;;  %p1347_p4 = scmp.ne.s32.totalorder (!%p1346_p1), %s1339_s18, 0 }
  0x40   : > { %172 = sbr.rel (%p1346_p1) target bundleno = 358 (0x166), region = 32  ;;  %s690_s27 = sshll.u32 (!%p1346_p1), %s1037_s26, 6 }
  0x41   : > { %s175_s28 = scalar_lea.sflag (!%p1346_p1), [#allocation3], %s1037_s26  ;;  %s1041_s29 = scalar_lea.vmem (!%p1346_p1), [#allocation2], %s690_s27 }
  0x45   : > { %864 = dma.done.wait (%p1347_p4), %s175_s28, 1024  }
  0x46   : > { %866 = vsyncadd (%p1347_p4), %s175_s28, 4294966272  ;;  %p1348_p6 = scmp.eq.s32.totalorder %s942_s16, 0 }
  0x48   : > { %868 = dma.done.wait (%p1348_p6), [#allocation6], 4096   ;;  %p1349_p8 = pmov %p1348_p6 }
  0x49   : > { %v897_v0 = vmov 0.0   ;;  %v1053_v1 = vld [vmem:[#allocation5 + $0xf8] sm:$0xff]  ;;  %v1055_v2 = vld [vmem:[#allocation5 + $0xf0] sm:$0xff]  ;;  %v1057_v3 = vld [vmem:[#allocation5 + $0xe8] sm:$0xff]  ;;  %v243_v41 = vlaneseq  ;;  %s692_s17 = sshll.u32 %s1037_s26, 7  ;;  %s702_s23 = sshll.u32 %s942_s16, 11 }
  0x4a   : > { %870 = vsyncadd (%p1349_p8), [#allocation6], 4294963200  ;;  %317 = vmatprep.mubr.f32.mxu0 %v897_v0  ;;  %400 = vmatprep.mubr.f32.mxu1 %v897_v0  ;;  %v1061_v4 = vld [vmem:[#allocation5 + $0xe0] sm:$0xff]  ;;  %v1065_v5 = vld [vmem:[#allocation5 + $0xd8] sm:$0xff]  ;;  %s1263_s22 = scalar_lea.vmem [#allocation7], %s692_s17  ;;  %s1282_s7 = scalar_lea.hbm %s1334_s3, %s702_s23 }
  0x4b   : > { %253 = vmatprep.subr.mxu0 %v1053_v1  ;;  %336 = vmatprep.subr.mxu1 %v1053_v1  ;;  %v1069_v6 = vld [vmem:[#allocation5 + $0xd0] sm:$0xff]  ;;  %v1073_v7 = vld [vmem:[#allocation5 + $0xc8] sm:$0xff]  ;;  %v1077_v8 = vld [vmem:[#allocation5 + $0xc0] sm:$0xff]  ;;  %v244_v42 = vshrl.u32 %v243_v41, 7  ;;  %s598_s25 = sshll.u32 %s1263_s22, 4  ;;  %s584_s16 = scalar_lea.sflag [#allocation4], %s1037_s26  ;;  %s1284_s25 = int_to_ptr.vmem [resolvable:$true] %s598_s25 }
  0x4c   : > { %254 = vmatpush1.msra.mxu0 %v1055_v2  ;;  %337 = vmatpush1.msra.mxu1 %v1055_v2  ;;  %v1081_v9 = vld [vmem:[#allocation5 + $0xb8] sm:$0xff]  ;;  %v1085_v10 = vld [vmem:[#allocation5 + $0xb0] sm:$0xff]  ;;  %v1089_v11 = vld [vmem:[#allocation5 + $0xa8] sm:$0xff]  ;;  %s821_s8 = scalar_lea.vmem %s1284_s25, 2048  ;;  %p1350_p11 = scmp.ne.s32.totalorder %s1344_s6, 0 }
  0x4d   : > { %255 = vmatprep.subr.mxu0 %v1057_v3  ;;  %338 = vmatprep.subr.mxu1 %v1057_v3  ;;  %v1093_v12 = vld [vmem:[#allocation5 + $0xa0] sm:$0xff]  ;;  %v1097_v13 = vld [vmem:[#allocation5 + $0x98] sm:$0xff]  ;;  %v1101_v14 = vld [vmem:[#allocation5 + $0x90] sm:$0xff]  ;;  %v245_v43 = vsub.s32 0, %v244_v42  ;;  %v249_v45 = vsub.s32 1, %v244_v42  ;;  %p822_p3 = scmp.ne.s32.totalorder %s1284_s25, %s821_s8  ;;  %s898_s9 = smov [#allocation7]  }
  0x4e   : > { %256 = vmatpush1.msra.mxu0 %v1061_v4  ;;  %339 = vmatpush1.msra.mxu1 %v1061_v4  ;;  %v1105_v15 = vld [vmem:[#allocation5 + $0x88] sm:$0xff]  ;;  %v1109_v16 = vld [vmem:[#allocation5 + $0x80] sm:$0xff]  ;;  %v1113_v17 = vld [vmem:[#allocation5 + $0x78] sm:$0xff]  ;;  %s825_s10 = sshll.u32 %s898_s9, 4  ;;  %s826_s10 = int_to_ptr.vmem [resolvable:$false] %s825_s10 }
  0x4f   : > { %257 = vmatprep.subr.mxu0 %v1065_v5  ;;  %340 = vmatprep.subr.mxu1 %v1065_v5  ;;  %v1117_v18 = vld [vmem:[#allocation5 + $0x70] sm:$0xff]  ;;  %v1121_v19 = vld [vmem:[#allocation5 + $0x68] sm:$0xff]  ;;  %v1125_v20 = vld [vmem:[#allocation5 + $0x60] sm:$0xff]  ;;  %p823_p7 = pnand %p822_p3, %p1350_p11  ;;  %s827_s11 = scalar_lea.vmem %s826_s10, 4096 }
  0x50   : > { %258 = vmatpush1.msra.mxu0 %v1069_v6  ;;  %341 = vmatpush1.msra.mxu1 %v1069_v6  ;;  %v1129_v21 = vld [vmem:[#allocation5 + $0x58] sm:$0xff]  ;;  %v1133_v22 = vld [vmem:[#allocation5 + $0x50] sm:$0xff]  ;;  %v1137_v23 = vld [vmem:[#allocation5 + $0x48] sm:$0xff]  ;;  %p828_p10 = scmp.lt.s32.totalorder %s1284_s25, %s826_s10  ;;  %p829_p2 = scmp.lt.s32.totalorder %s827_s11, %s821_s8 }
  0x51   : > { %259 = vmatprep.subr.mxu0 %v1073_v7  ;;  %342 = vmatprep.subr.mxu1 %v1073_v7  ;;  %v1141_v24 = vld [vmem:[#allocation5 + $0x40] sm:$0xff]  ;;  %v1145_v25 = vld [vmem:[#allocation5 + $0x38] sm:$0xff]  ;;  %v1149_v26 = vld [vmem:[#allocation5 + $0x30] sm:$0xff]  ;;  %p824_p12 = pneg %p823_p7 }
  0x52   : > { %260 = vmatpush1.msra.mxu0 %v1077_v8  ;;  %343 = vmatpush1.msra.mxu1 %v1077_v8  ;;  %v1153_v27 = vld [vmem:[#allocation5 + $0x28] sm:$0xff]  ;;  %v1157_v28 = vld [vmem:[#allocation5 + $0x20] sm:$0xff]  ;;  %v1161_v29 = vld [vmem:[#allocation5 + $0x18] sm:$0xff]  ;;  %p830_p13 = por %p829_p2, %p828_p10 }
  0x53   : > { %261 = vmatprep.subr.mxu0 %v1081_v9  ;;  %344 = vmatprep.subr.mxu1 %v1081_v9  ;;  %v1165_v30 = vld [vmem:[#allocation5 + $0x10] sm:$0xff]  ;;  %v1169_v31 = vld [vmem:[#allocation5 + $0x8] sm:$0xff]  ;;  %v1173_v32 = vld [vmem:[#allocation5] sm:$0xff] }
  0x54   : > { %262 = vmatpush1.msra.mxu0 %v1085_v10  ;;  %345 = vmatpush1.msra.mxu1 %v1085_v10  ;;  %v240_v33 = vld [vmem:[%s1041_s29] sm:$0xff]  ;;  %v334_v34 = vld [vmem:[%s1041_s29 + $0x8] sm:$0xff]  ;;  %v417_v37 = vld [vmem:[%s1041_s29 + $0x10] sm:$0xff]  ;;  %p831_p0 = pnand %p830_p13, %p824_p12 }
  0x55   : > { %263 = vmatprep.subr.mxu0 %v1089_v11  ;;  %346 = vmatprep.subr.mxu1 %v1089_v11  ;;  %v241_v35 = vld [vmem:[%s1041_s29 + $0x20] sm:$0xff]  ;;  %v335_v36 = vld [vmem:[%s1041_s29 + $0x28] sm:$0xff]  ;;  %v500_v38 = vld [vmem:[%s1041_s29 + $0x18] sm:$0xff] }
  0x56   : > { %264 = vmatpush1.msra.mxu0 %v1093_v12  ;;  %347 = vmatpush1.msra.mxu1 %v1093_v12  ;;  %v418_v39 = vld [vmem:[%s1041_s29 + $0x30] sm:$0xff]  ;;  %v501_v40 = vld [vmem:[%s1041_s29 + $0x38] sm:$0xff]  ;;  %v239_v44 = vld [vmem:[%s1333_s2] sm:$0x3] }
  0x57   : > { %265 = vmatprep.subr.mxu0 %v1097_v13  ;;  %348 = vmatprep.subr.mxu1 %v1097_v13  ;;  %v246_v46 = vrot.slane %v239_v44, %v245_v43  ;;  %v250_v47 = vrot.slane %v239_v44, %v249_v45 }
  0x58   : > { %266 = vmatpush1.msra.mxu0 %v1101_v14  ;;  %349 = vmatpush1.msra.mxu1 %v1101_v14 }
  0x59   : > { %267 = vmatprep.subr.mxu0 %v1105_v15  ;;  %350 = vmatprep.subr.mxu1 %v1105_v15 }
  0x5a   : > { %268 = vmatpush1.msra.mxu0 %v1109_v16  ;;  %351 = vmatpush1.msra.mxu1 %v1109_v16 }
  0x5b   : > { %269 = vmatprep.subr.mxu0 %v1113_v17  ;;  %352 = vmatprep.subr.mxu1 %v1113_v17 }
  0x5c   : > { %270 = vmatpush1.msra.mxu0 %v1117_v18  ;;  %353 = vmatpush1.msra.mxu1 %v1117_v18 }
  0x5d   : > { %271 = vmatprep.subr.mxu0 %v1121_v19  ;;  %354 = vmatprep.subr.mxu1 %v1121_v19 }
  0x5e   : > { %272 = vmatpush1.msra.mxu0 %v1125_v20  ;;  %355 = vmatpush1.msra.mxu1 %v1125_v20 }
  0x5f   : > { %273 = vmatprep.subr.mxu0 %v1129_v21  ;;  %356 = vmatprep.subr.mxu1 %v1129_v21 }
  0x60   : > { %274 = vmatpush1.msra.mxu0 %v1133_v22  ;;  %357 = vmatpush1.msra.mxu1 %v1133_v22 }
  0x61   : > { %275 = vmatprep.subr.mxu0 %v1137_v23  ;;  %358 = vmatprep.subr.mxu1 %v1137_v23 }
  0x62   : > { %276 = vmatpush1.msra.mxu0 %v1141_v24  ;;  %359 = vmatpush1.msra.mxu1 %v1141_v24 }
  0x63   : > { %277 = vmatprep.subr.mxu0 %v1145_v25  ;;  %360 = vmatprep.subr.mxu1 %v1145_v25 }
  0x64   : > { %278 = vmatpush1.msra.mxu0 %v1149_v26  ;;  %361 = vmatpush1.msra.mxu1 %v1149_v26 }
  0x65   : > { %279 = vmatprep.subr.mxu0 %v1153_v27  ;;  %362 = vmatprep.subr.mxu1 %v1153_v27 }
  0x66   : > { %280 = vmatpush1.msra.mxu0 %v1157_v28  ;;  %363 = vmatpush1.msra.mxu1 %v1157_v28 }
  0x67   : > { %281 = vmatprep.subr.mxu0 %v1161_v29  ;;  %364 = vmatprep.subr.mxu1 %v1161_v29 }
  0x68   : > { %282 = vmatpush1.msra.mxu0 %v1165_v30  ;;  %365 = vmatpush1.msra.mxu1 %v1165_v30 }
  0x69   : > { %283 = vmatprep.subr.mxu0 %v1169_v31  ;;  %366 = vmatprep.subr.mxu1 %v1169_v31 }
  0x6a   : > { %284 = vmatpush1.msra.mxu0 %v1173_v32  ;;  %367 = vmatpush1.msra.mxu1 %v1173_v32 }
  0x6b   : > { %318 = vmatmul.mubr.f32.vlgmr.msra.gmra.mxu0 %v240_v33  ;;  %401 = vmatmul.mubr.f32.vlgmr.msra.gmra.mxu1 %v334_v34 }
  0x6c   : > { %419 = vmatprep.subr.mxu0 %v1053_v1  ;;  %502 = vmatprep.subr.mxu1 %v1053_v1 }
  0x6d   : > { %420 = vmatpush1.msra.mxu0 %v1055_v2  ;;  %503 = vmatpush1.msra.mxu1 %v1055_v2 }
  0x6e   : > { %421 = vmatprep.subr.mxu0 %v1057_v3  ;;  %504 = vmatprep.subr.mxu1 %v1057_v3 }
  0x6f   : > { %422 = vmatpush1.msra.mxu0 %v1061_v4  ;;  %505 = vmatpush1.msra.mxu1 %v1061_v4 }
  0x70   : > { %423 = vmatprep.subr.mxu0 %v1065_v5  ;;  %506 = vmatprep.subr.mxu1 %v1065_v5 }
  0x71   : > { %424 = vmatpush1.msra.mxu0 %v1069_v6  ;;  %507 = vmatpush1.msra.mxu1 %v1069_v6 }
  0x72   : > { %425 = vmatprep.subr.mxu0 %v1073_v7  ;;  %508 = vmatprep.subr.mxu1 %v1073_v7 }
  0x73   : > { %426 = vmatpush1.msra.mxu0 %v1077_v8  ;;  %509 = vmatpush1.msra.mxu1 %v1077_v8 }
  0x74   : > { %427 = vmatprep.subr.mxu0 %v1081_v9  ;;  %510 = vmatprep.subr.mxu1 %v1081_v9 }
  0x75   : > { %428 = vmatpush1.msra.mxu0 %v1085_v10  ;;  %511 = vmatpush1.msra.mxu1 %v1085_v10 }
  0x76   : > { %429 = vmatprep.subr.mxu0 %v1089_v11  ;;  %512 = vmatprep.subr.mxu1 %v1089_v11 }
  0x77   : > { %430 = vmatpush1.msra.mxu0 %v1093_v12  ;;  %513 = vmatpush1.msra.mxu1 %v1093_v12 }
  0x78   : > { %431 = vmatprep.subr.mxu0 %v1097_v13  ;;  %514 = vmatprep.subr.mxu1 %v1097_v13 }
  0x79   : > { %432 = vmatpush1.msra.mxu0 %v1101_v14  ;;  %515 = vmatpush1.msra.mxu1 %v1101_v14 }
  0x7a   : > { %433 = vmatprep.subr.mxu0 %v1105_v15  ;;  %516 = vmatprep.subr.mxu1 %v1105_v15 }
  0x7b   : > { %434 = vmatpush1.msra.mxu0 %v1109_v16  ;;  %517 = vmatpush1.msra.mxu1 %v1109_v16 }
  0x7c   : > { %435 = vmatprep.subr.mxu0 %v1113_v17  ;;  %518 = vmatprep.subr.mxu1 %v1113_v17 }
  0x7d   : > { %436 = vmatpush1.msra.mxu0 %v1117_v18  ;;  %519 = vmatpush1.msra.mxu1 %v1117_v18 }
  0x7e   : > { %437 = vmatprep.subr.mxu0 %v1121_v19  ;;  %520 = vmatprep.subr.mxu1 %v1121_v19 }
  0x7f   : > { %438 = vmatpush1.msra.mxu0 %v1125_v20  ;;  %521 = vmatpush1.msra.mxu1 %v1125_v20 }
  0x80   : > { %439 = vmatprep.subr.mxu0 %v1129_v21  ;;  %522 = vmatprep.subr.mxu1 %v1129_v21 }
  0x81   : > { %440 = vmatpush1.msra.mxu0 %v1133_v22  ;;  %523 = vmatpush1.msra.mxu1 %v1133_v22 }
  0x82   : > { %441 = vmatprep.subr.mxu0 %v1137_v23  ;;  %524 = vmatprep.subr.mxu1 %v1137_v23 }
  0x83   : > { %442 = vmatpush1.msra.mxu0 %v1141_v24  ;;  %525 = vmatpush1.msra.mxu1 %v1141_v24 }
  0x84   : > { %443 = vmatprep.subr.mxu0 %v1145_v25  ;;  %526 = vmatprep.subr.mxu1 %v1145_v25 }
  0x85   : > { %323 = vmatprep.mubr.f32.mxu0 %v897_v0  ;;  %406 = vmatprep.mubr.f32.mxu1 %v897_v0 }
  0x86   : > { %444 = vmatpush1.msra.mxu0 %v1149_v26  ;;  %527 = vmatpush1.msra.mxu1 %v1149_v26 }
  0x87   : > { %324 = vmatmul.mubr.f32.gmra.mxu0 %v241_v35  ;;  %407 = vmatmul.mubr.f32.gmra.mxu1 %v335_v36 }
  0x88   : > { %445 = vmatprep.subr.mxu0 %v1153_v27  ;;  %528 = vmatprep.subr.mxu1 %v1153_v27 }
  0x89   : > { %446 = vmatpush1.msra.mxu0 %v1157_v28  ;;  %529 = vmatpush1.msra.mxu1 %v1157_v28 }
  0x8a   : > { %447 = vmatprep.subr.mxu0 %v1161_v29  ;;  %530 = vmatprep.subr.mxu1 %v1161_v29 }
  0x8b   : > { %448 = vmatpush1.msra.mxu0 %v1165_v30  ;;  %531 = vmatpush1.msra.mxu1 %v1165_v30 }
  0x8c   : > { %449 = vmatprep.subr.mxu0 %v1169_v31  ;;  %532 = vmatprep.subr.mxu1 %v1169_v31 }
  0x8d   : > { %450 = vmatpush1.msra.mxu0 %v1173_v32  ;;  %483 = vmatprep.mubr.f32.mxu0 %v897_v0 }
  0x8e   : > { %533 = vmatpush1.msra.mxu1 %v1173_v32  ;;  %566 = vmatprep.mubr.f32.mxu1 %v897_v0 }
  0x8f   : > { %484 = vmatmul.mubr.f32.vlgmr.msra.gmra.mxu0 %v417_v37  ;;  %567 = vmatmul.mubr.f32.vlgmr.msra.gmra.mxu1 %v500_v38 }
  0x90   : > { %489 = vmatprep.mubr.f32.mxu0 %v897_v0  ;;  %572 = vmatprep.mubr.f32.mxu1 %v897_v0 }
  0x93   : > { %490 = vmatmul.mubr.f32.gmra.mxu0 %v418_v39  ;;  %573 = vmatmul.mubr.f32.gmra.mxu1 %v501_v40 }
 0x12b   : > { %v319_v48 = vpop.f32.mrf.mxu0  ;;  %v402_v49 = vpop.f32.mrf.mxu1 }
 0x12c   : > { %v320_v50 = vadd.f32 %v319_v48, %v246_v46  ;;  %v403_v51 = vadd.f32 %v402_v49, %v246_v46 }
 0x12d   : > { %v321_v52 = vpop.f32.mrf.mxu0  ;;  %v404_v53 = vpop.f32.mrf.mxu1 }
 0x12e   : > { %330 = vst [vmem:[%s1263_s22] sm:$0xff] %v320_v50  ;;  %413 = vst [vmem:[%s1263_s22 + $0x8] sm:$0xff] %v403_v51  ;;  %v322_v54 = vadd.f32 %v321_v52, %v250_v47  ;;  %v405_v55 = vadd.f32 %v404_v53, %v250_v47 }
 0x130   : > { %332 = vst [vmem:[%s1263_s22 + $0x20] sm:$0xff] %v322_v54  ;;  %415 = vst [vmem:[%s1263_s22 + $0x28] sm:$0xff] %v405_v55 }
 0x147   : > { %v325_v56 = vpop.f32.mrf.mxu0  ;;  %v408_v57 = vpop.f32.mrf.mxu1 }
 0x148   : > { %v326_v58 = vadd.f32 %v325_v56, %v246_v46  ;;  %v409_v59 = vadd.f32 %v408_v57, %v246_v46 }
 0x149   : > { %v327_v60 = vpop.f32.mrf.mxu0  ;;  %v410_v61 = vpop.f32.mrf.mxu1 }
 0x14a   : > { %331 = vst [vmem:[%s1263_s22 + $0x40] sm:$0xff] %v326_v58  ;;  %414 = vst [vmem:[%s1263_s22 + $0x48] sm:$0xff] %v409_v59  ;;  %v328_v62 = vadd.f32 %v327_v60, %v250_v47  ;;  %v411_v63 = vadd.f32 %v410_v61, %v250_v47 }
 0x14c   : > { %333 = vst [vmem:[%s1263_s22 + $0x60] sm:$0xff] %v328_v62  ;;  %416 = vst [vmem:[%s1263_s22 + $0x68] sm:$0xff] %v411_v63 }
 0x14f   : > { %v485_v0 = vpop.f32.mrf.mxu0  ;;  %v568_v1 = vpop.f32.mrf.mxu1 }
 0x150   : > { %v486_v2 = vadd.f32 %v485_v0, %v246_v46  ;;  %v569_v3 = vadd.f32 %v568_v1, %v246_v46 }
 0x151   : > { %v487_v4 = vpop.f32.mrf.mxu0  ;;  %v570_v5 = vpop.f32.mrf.mxu1 }
 0x152   : > { %496 = vst [vmem:[%s1263_s22 + $0x10] sm:$0xff] %v486_v2  ;;  %579 = vst [vmem:[%s1263_s22 + $0x18] sm:$0xff] %v569_v3  ;;  %v488_v6 = vadd.f32 %v487_v4, %v250_v47  ;;  %v571_v7 = vadd.f32 %v570_v5, %v250_v47 }
 0x153   : > { %v491_v8 = vpop.f32.mrf.mxu0  ;;  %v574_v9 = vpop.f32.mrf.mxu1 }
 0x154   : > { %498 = vst [vmem:[%s1263_s22 + $0x30] sm:$0xff] %v488_v6  ;;  %581 = vst [vmem:[%s1263_s22 + $0x38] sm:$0xff] %v571_v7  ;;  %v492_v10 = vadd.f32 %v491_v8, %v246_v46  ;;  %v575_v11 = vadd.f32 %v574_v9, %v246_v46 }
 0x155   : > { %v493_v12 = vpop.f32.mrf.mxu0  ;;  %v576_v13 = vpop.f32.mrf.mxu1 }
 0x156   : > { %497 = vst [vmem:[%s1263_s22 + $0x50] sm:$0xff] %v492_v10  ;;  %580 = vst [vmem:[%s1263_s22 + $0x58] sm:$0xff] %v575_v11  ;;  %v494_v14 = vadd.f32 %v493_v12, %v250_v47  ;;  %v577_v15 = vadd.f32 %v576_v13, %v250_v47 }
 0x158   : > { %499 = vst [vmem:[%s1263_s22 + $0x70] sm:$0xff] %v494_v14  ;;  %582 = vst [vmem:[%s1263_s22 + $0x78] sm:$0xff] %v577_v15 }
 0x159   : > { %834 = shalt.err (!%p831_p0)
}
 0x15a   : > { %s835_s21 = scalar_lea.hbm %s1282_s7, 2048  ;;  %s839_s29 = scalar_lea.hbm %s1334_s3, 4096 }
 0x15b   : > { %p836_p5 = scmp.ne.s32.totalorder %s1282_s7, %s835_s21  ;;  %p840_p4 = scmp.lt.s32.totalorder %s1282_s7, %s1334_s3 }
 0x15c   : > { %p841_p6 = scmp.lt.s32.totalorder %s839_s29, %s835_s21 }
 0x15d   : > { %p837_p9 = pnand %p836_p5, %p1350_p11 }
 0x15e   : > { %p842_p8 = por %p841_p6, %p840_p4 }
 0x15f   : > { %p838_p1 = pneg %p837_p9 }
 0x161   : > { %p843_p3 = pnand %p842_p8, %p838_p1 }
 0x163   : > { %846 = shalt.err (!%p843_p3)
}
 0x164   : > { %s899_s17 = smov 1024   ;;  %s900_s22 = smov 64  }
 0x165   : > { %709 = dma.vmem_to_hbm [thread:$0]  (%p1350_p11), %s1284_s25, 2048, %s1282_s7, %s584_s16, %s899_s17, %s899_s17, %s900_s22  }
 0x166 PF: > { %s613_s23 = sand.u32 1, %s877_s12   ;;  %p1351_p7 = scmp.ne.s32.totalorder %s1340_s19, 0 }
 0x167   : > { %p1352_p12 = scmp.ge.s32.totalorder %s889_s15, 2  ;;  %s614_s30 = scalar_lea.sflag [#allocation4], %s613_s23 }
 0x169   : > { %p720_p10 = pnand %p1352_p12, %p1351_p7 }
 0x16b   : > { %p721_p2 = pneg %p720_p10 }
 0x16d   : > { %872 = dma.done.wait (%p721_p2), %s614_s30, 2048  }
 0x16e   : > { %874 = vsyncadd (%p721_p2), %s614_s30, 4294965248  ;;  %p17_p13 = scmp.ge.s32.totalorder %s975_s24, 4   ;;  %s1353_s12 = smov %s881_s13 }
 0x16f   : > { %s1354_s13 = smov %s885_s14  ;;  %s1355_s14 = smov %s992_s5 }
 0x170   : > { %s1356_s15 = smov %s975_s24  ;;  %19 = sbr.rel (!%p17_p13) target bundleno = 6 (0x6), region = 81 }
 0x175   :  { %619 = vsyncpa [#allocation3], 1 }
 0x176   :  { %621 = vsyncpa [#allocation3 + $0x1], 1 }
 0x177   :  { %622 = vsyncpa [#allocation6], 1 }
 0x178   :  { %623 = vsyncpa [#allocation4], 1 }
 0x179   :  { %625 = vsyncpa [#allocation4 + $0x1], 1 }

</bundles_post_ra>
